<compile_context>
chip_gen: v5e
topology: v5e:2x2
jax: 0.10.0
libtpu: 0.0.40
codegen_flags: <defaults>
</compile_context>

<pallas_src>
import functools
import math

import jax
import jax.numpy as jnp
from jax import lax
from jax.experimental import pallas as pl
from jax.experimental.pallas import tpu as pltpu


def _erf(x):
    """Abramowitz & Stegun 7.1.26 erf approximation (|error| < 1.5e-7).

    Keeps nn.GELU's exact-erf semantics using only ops with guaranteed Mosaic
    lowerings (abs / exp / mul / add / div / where).
    """
    p = 0.3275911
    a1, a2, a3, a4, a5 = (0.254829592, -0.284496736, 1.421413741,
                          -1.453152027, 1.061405429)
    sgn = jnp.where(x < 0.0, -1.0, 1.0)
    ax = jnp.abs(x)
    t = 1.0 / (1.0 + p * ax)
    poly = ((((a5 * t + a4) * t + a3) * t + a2) * t + a1) * t
    return sgn * (1.0 - poly * jnp.exp(-ax * ax))


def _gelu(x):
    return 0.5 * x * (1.0 + _erf(x * (1.0 / math.sqrt(2.0))))


def _sum_all(t):
    """Sum of all elements of a 2D tile, kept as a (1, 1) array."""
    return jnp.sum(jnp.sum(t, axis=-1, keepdims=True), axis=-2, keepdims=True)


def _poolformer_block_kernel(
    x_ref, aux_ref, pc_ref, fb1_ref, w1_ref, w2_ref, o_ref, xp_ref,
    *, W, HW, HWp, eps, mlp_chunk):
    C = x_ref.shape[1]
    inv_n = 1.0 / float(C * HW)          # stats over *valid* elements only
    n_pad = float(C * (HWp - HW))        # number of zero pad elements

    # Per-channel parameter columns (C, 1): [g1, b1, ls1, g2, b2, ls2, fb2].
    g1, b1, ls1 = pc_ref[:, 0:1], pc_ref[:, 1:2], pc_ref[:, 2:3]
    g2, b2, ls2 = pc_ref[:, 3:4], pc_ref[:, 4:5], pc_ref[:, 5:6]
    fb2 = pc_ref[:, 6:7]
    fb1 = fb1_ref[...]                   # (Hd, 1) f32

    aux = aux_ref[...]                   # (5, HWp) f32 precomputed pool masks
    m_l, m_r = aux[0:1, :], aux[1:2, :]  # left / right neighbour in-bounds
    m_u, m_d = aux[2:3, :], aux[3:4, :]  # up / down neighbour in-bounds
    inv_cnt = aux[4:5, :]                # 1 / (#in-bounds window elems), 1 in pad

    # ---- zero-pad x into a lane-aligned (C, HWp) VMEM slab (no host pad).
    if HWp == HW:
        x = x_ref[0].astype(jnp.float32)
    else:
        xp_ref[:, HW:HWp] = jnp.zeros((C, HWp - HW), jnp.float32)
        xp_ref[:, 0:HW] = x_ref[0].astype(jnp.float32)
        x = xp_ref[...]                  # pad lanes are exactly 0

    # ---- norm1: GroupNorm(1 group) over (C, H, W); centered variance with an
    # exact scalar correction for the pad lanes (xc there is exactly -mu1).
    mu1 = _sum_all(x) * inv_n
    xc = x - mu1
    var1 = jnp.maximum((_sum_all(xc * xc) - n_pad * mu1 * mu1) * inv_n, 0.0)
    r1 = lax.rsqrt(var1 + eps)
    n1 = xc * (r1 * g1) + b1                                     # (C, HWp)

    # ---- token mixer: 3x3 avg pool (stride 1, pad 1, count_include_pad=False)
    # minus identity. Neighbours on the flattened lane axis sit at +-1 / +-W;
    # boundary (and pad) contributions are masked, then divided by the
    # per-position count of in-bounds window elements.
    left = jnp.roll(n1, 1, axis=1)       # value at i-1 lands at position i
    right = jnp.roll(n1, -1, axis=1)
    rw = m_l * left + n1 + m_r * right
    up = jnp.roll(rw, W, axis=1)
    down = jnp.roll(rw, -W, axis=1)
    s3 = m_u * up + rw + m_d * down
    mixed = s3 * inv_cnt - n1            # exactly 0 on pad lanes

    y1 = x + ls1 * mixed                 # pad lanes stay exactly 0

    # ---- norm2 over the first-branch output.
    mu2 = _sum_all(y1) * inv_n
    yc = y1 - mu2
    var2 = jnp.maximum((_sum_all(yc * yc) - n_pad * mu2 * mu2) * inv_n, 0.0)
    r2 = lax.rsqrt(var2 + eps)
    n2 = yc * (r2 * g2) + b2

    # ---- MLP: 1x1 convolutions == channel matmuls on the MXU (bf16 inputs,
    # f32 accumulation), chunked over the lane axis so the (Hd, chunk) hidden
    # slab is the only hidden activation alive at a time.
    w1 = w1_ref[...]                     # (Hd, C)  bf16
    w2 = w2_ref[...]                     # (C, Hd)  bf16
    for s in range(0, HWp, mlp_chunk):
        if s >= HW:
            break
        e = min(s + mlp_chunk, HWp)
        stop = min(e, HW)
        n2c = n2[:, s:e].astype(jnp.bfloat16)
        h = jnp.dot(w1, n2c, preferred_element_type=jnp.float32) + fb1
        h = _gelu(h)
        m = jnp.dot(w2, h.astype(jnp.bfloat16),
                    preferred_element_type=jnp.float32) + fb2
        y2c = y1[:, s:e] + ls2 * m
        o_ref[0, :, s:stop] = y2c[:, :stop - s].astype(o_ref.dtype)


def poolformer_block(x, g1, b1, ls1, g2, b2, w1, fb1, w2, fb2, ls2, *,
                     eps=1e-5, mlp_chunk=512):
    """PoolFormerBlock forward.

    x: [B, C, H, W] (NCHW).  g*/b*: GroupNorm weight/bias [C].  ls1/ls2:
    layer-scale [C].  w1/fb1: fc1 1x1-conv weight [Hd, C] / bias [Hd].
    w2/fb2: fc2 1x1-conv weight [C, Hd] / bias [C].
    """
    B, C, H, W = x.shape
    Hd = w1.shape[0]
    HW = H * W
    HWp = pl.cdiv(HW, 128) * 128                 # lane-aligned compute width
    mlp_chunk = min(HWp, max(128, (mlp_chunk // 128) * 128))

    # Contiguous reshape (no HBM copy); padding happens in-kernel.
    x2 = x.reshape(B, C, HW)

    # Pooling masks / inverse window counts (one (HWp,) row each).
    idx = jnp.arange(HWp, dtype=jnp.int32)
    wi = idx % W
    hi = idx // W
    valid = idx < HW
    f32 = lambda a: a.astype(jnp.float32)
    cnt = (1 + (wi > 0) + (wi < W - 1)) * (1 + (hi > 0) + (hi < H - 1))
    aux = jnp.stack([
        f32(valid & (wi > 0)),            # left neighbour in bounds
        f32(valid & (wi < W - 1)),        # right
        f32(valid & (hi > 0)),            # up
        f32(valid & (hi < H - 1)),        # down
        jnp.where(valid, 1.0 / f32(cnt), 1.0),
    ])                                    # (5, HWp)

    # Per-channel parameters packed into one (C, 7) block of columns.
    pc = jnp.stack([g1, b1, ls1, g2, b2, ls2, fb2], axis=1).astype(jnp.float32)
    fb1c = fb1.reshape(-1, 1).astype(jnp.float32)
    # Weights stored bf16 on the host so the MXU gets bf16 with no in-kernel cast.
    w1b = w1.astype(jnp.bfloat16)
    w2b = w2.astype(jnp.bfloat16)

    # Explicit VMEM budget (review item): IO blocks (double-buffered),
    # replicated params, live f32 (C, HWp) slabs and the chunked MLP hidden.
    slab = C * HWp * 4
    est = (2 * 2 * C * HW * 4
           + 2 * (5 * HWp * 4 + C * 7 * 4 + Hd * 4)
           + 2 * 2 * Hd * C * 2
           + 10 * slab
           + 4 * Hd * mlp_chunk * 4)
    vmem_limit = int(min(96 * 1024 * 1024, max(32 * 1024 * 1024, 2 * est)))

    def rep(a):   # whole-array block, re-used (block index 0) at every step
        zeros = (0,) * a.ndim
        return pl.BlockSpec(a.shape, lambda i: zeros)

    out = pl.pallas_call(
        functools.partial(_poolformer_block_kernel, W=W, HW=HW, HWp=HWp,
                          eps=eps, mlp_chunk=mlp_chunk),
        out_shape=jax.ShapeDtypeStruct((B, C, HW), x.dtype),
        grid_spec=pltpu.PrefetchScalarGridSpec(
            num_scalar_prefetch=0,
            grid=(B,),
            in_specs=[
                pl.BlockSpec((1, C, HW), lambda i: (i, 0, 0)),
                rep(aux), rep(pc), rep(fb1c), rep(w1b), rep(w2b),
            ],
            out_specs=pl.BlockSpec((1, C, HW), lambda i: (i, 0, 0)),
            scratch_shapes=[pltpu.VMEM((C, HWp), jnp.float32)],
        ),
        compiler_params=pltpu.CompilerParams(
            dimension_semantics=("parallel",),
            vmem_limit_bytes=vmem_limit,
        ),
    )(x2, aux, pc, fb1c, w1b, w2b)

    return out.reshape(B, C, H, W)


def _reference(x, g1, b1, ls1, g2, b2, w1, fb1, w2, fb2, ls2, eps=1e-5):
    """Pure-JAX re-implementation of the PyTorch PoolFormerBlock forward."""
    def group_norm(t, g, b):
        mu = jnp.mean(t, axis=(1, 2, 3), keepdims=True)
        var = jnp.mean((t - mu) ** 2, axis=(1, 2, 3), keepdims=True)
        return (t - mu) / jnp.sqrt(var + eps) * g[None, :, None, None] \
            + b[None, :, None, None]

    def avg_pool_3x3(t):   # stride 1, padding 1, count_include_pad=False
        win, strd = (1, 1, 3, 3), (1, 1, 1, 1)
        pad = ((0, 0), (0, 0), (1, 1), (1, 1))
        s = lax.reduce_window(t, 0.0, lax.add, win, strd, pad)
        c = lax.reduce_window(jnp.ones_like(t), 0.0, lax.add, win, strd, pad)
        return s / c

    hp = lax.Precision.HIGHEST
    n1 = group_norm(x, g1, b1)
    y1 = x + ls1[None, :, None, None] * (avg_pool_3x3(n1) - n1)
    n2 = group_norm(y1, g2, b2)
    h = jnp.einsum("oc,bchw->bohw", w1, n2, precision=hp) \
        + fb1[None, :, None, None]
    h = jax.nn.gelu(h, approximate=False)           # nn.GELU default (erf)
    m = jnp.einsum("co,bohw->bchw", w2, h, precision=hp) \
        + fb2[None, :, None, None]
    return y1 + ls2[None, :, None, None] * m


if __name__ == "__main__":
    B, C, H, W = 2, 4, 16, 16          # small PoolFormer-like shapes
    mlp_ratio = 4
    Hd = C * mlp_ratio
    eps = 1e-5

    key = jax.random.PRNGKey(0)
    ks = jax.random.split(key, 12)

    x = jax.random.normal(ks[0], (B, C, H, W), dtype=jnp.float32)
    # Parameters, perturbed away from the torch inits (ones/zeros/1e-5/
    # trunc-normal) so every term of the forward pass is exercised.
    g1 = 1.0 + 0.1 * jax.random.normal(ks[1], (C,), jnp.float32)
    b1 = 0.1 * jax.random.normal(ks[2], (C,), jnp.float32)
    g2 = 1.0 + 0.1 * jax.random.normal(ks[3], (C,), jnp.float32)
    b2 = 0.1 * jax.random.normal(ks[4], (C,), jnp.float32)
    ls1 = 0.5 + 0.1 * jax.random.normal(ks[5], (C,), jnp.float32)
    ls2 = 0.5 + 0.1 * jax.random.normal(ks[6], (C,), jnp.float32)
    w1 = 0.1 * jax.random.normal(ks[7], (Hd, C), jnp.float32)   # fc1 (1x1 conv)
    fb1 = 0.1 * jax.random.normal(ks[8], (Hd,), jnp.float32)
    w2 = 0.1 * jax.random.normal(ks[9], (C, Hd), jnp.float32)   # fc2 (1x1 conv)
    fb2 = 0.1 * jax.random.normal(ks[10], (C,), jnp.float32)

    args = (g1, b1, ls1, g2, b2, w1, fb1, w2, fb2, ls2)

    # Tolerance is 2e-2 because the MLP matmuls feed the MXU bf16 operands
    # (f32 accumulation) while the reference runs f32 HIGHEST precision.
    TOL = 2e-2

    # Case 1: H*W is a multiple of 128 (no in-kernel lane padding needed).
    y = poolformer_block(x, *args, eps=eps)
    y = jax.block_until_ready(y)
    y_ref = _reference(x, *args, eps=eps)
    assert y.shape == (B, C, H, W)
    err = float(jnp.max(jnp.abs(y - y_ref)))
    assert jnp.allclose(y, y_ref, atol=TOL, rtol=TOL), err

    # Case 2: H*W not a multiple of 128 (exercises the in-kernel pad path).
    Hs, Ws = 14, 14
    xs = jax.random.normal(ks[11], (B, C, Hs, Ws), dtype=jnp.float32)
    ys = poolformer_block(xs, *args, eps=eps)
    ys = jax.block_until_ready(ys)
    ys_ref = _reference(xs, *args, eps=eps)
    assert ys.shape == (B, C, Hs, Ws)
    err_s = float(jnp.max(jnp.abs(ys - ys_ref)))
    assert jnp.allclose(ys, ys_ref, atol=TOL, rtol=TOL), err_s

    print("KERNEL_OK")
</pallas_src>

<mosaic_0001>
module attributes {stable_mosaic.version = 11 : i64} {
  func.func @_poolformer_block_kernel(%arg0: i32, %arg1: memref<1x4x256xf32, #tpu.memory_space<vmem>>, %arg2: memref<5x256xf32, #tpu.memory_space<vmem>>, %arg3: memref<4x7xf32, #tpu.memory_space<vmem>>, %arg4: memref<16x1xf32, #tpu.memory_space<vmem>>, %arg5: memref<16x4xbf16, #tpu.memory_space<vmem>>, %arg6: memref<4x16xbf16, #tpu.memory_space<vmem>>, %arg7: memref<1x4x256xf32, #tpu.memory_space<vmem>>, %arg8: memref<4x256xf32, #tpu.memory_space<vmem>>) attributes {dimension_semantics = [#tpu.dimension_semantics<parallel>], iteration_bounds = array<i64: 2>, scalar_prefetch = 0 : i64, scratch_operands = 1 : i64, tpu.core_type = #tpu.core_type<tc>, window_params = [{transform_indices = @transform_0, window_bounds = array<i64: 1, 4, 256>}, {pipeline_mode = #tpu.pipeline_mode<synchronous>, transform_indices = @transform_1, window_bounds = array<i64: 5, 256>}, {pipeline_mode = #tpu.pipeline_mode<synchronous>, transform_indices = @transform_2, window_bounds = array<i64: 4, 7>}, {pipeline_mode = #tpu.pipeline_mode<synchronous>, transform_indices = @transform_3, window_bounds = array<i64: 16, 1>}, {pipeline_mode = #tpu.pipeline_mode<synchronous>, transform_indices = @transform_4, window_bounds = array<i64: 16, 4>}, {pipeline_mode = #tpu.pipeline_mode<synchronous>, transform_indices = @transform_5, window_bounds = array<i64: 4, 16>}, {transform_indices = @transform_6, window_bounds = array<i64: 1, 4, 256>}]} {
    %c0 = arith.constant 0 : index
    %c0_0 = arith.constant 0 : index
    %0 = vector.load %arg3[%c0, %c0_0] : memref<4x7xf32, #tpu.memory_space<vmem>>, vector<4x1xf32>
    %c0_1 = arith.constant 0 : index
    %c1 = arith.constant 1 : index
    %1 = vector.load %arg3[%c0_1, %c1] : memref<4x7xf32, #tpu.memory_space<vmem>>, vector<4x1xf32>
    %c0_2 = arith.constant 0 : index
    %c2 = arith.constant 2 : index
    %2 = vector.load %arg3[%c0_2, %c2] : memref<4x7xf32, #tpu.memory_space<vmem>>, vector<4x1xf32>
    %c0_3 = arith.constant 0 : index
    %c3 = arith.constant 3 : index
    %3 = vector.load %arg3[%c0_3, %c3] : memref<4x7xf32, #tpu.memory_space<vmem>>, vector<4x1xf32>
    %c0_4 = arith.constant 0 : index
    %c4 = arith.constant 4 : index
    %4 = vector.load %arg3[%c0_4, %c4] : memref<4x7xf32, #tpu.memory_space<vmem>>, vector<4x1xf32>
    %c0_5 = arith.constant 0 : index
    %c5 = arith.constant 5 : index
    %5 = vector.load %arg3[%c0_5, %c5] : memref<4x7xf32, #tpu.memory_space<vmem>>, vector<4x1xf32>
    %c0_6 = arith.constant 0 : index
    %c6 = arith.constant 6 : index
    %6 = vector.load %arg3[%c0_6, %c6] : memref<4x7xf32, #tpu.memory_space<vmem>>, vector<4x1xf32>
    %c0_7 = arith.constant 0 : index
    %c0_8 = arith.constant 0 : index
    %7 = vector.load %arg4[%c0_7, %c0_8] : memref<16x1xf32, #tpu.memory_space<vmem>>, vector<16x1xf32>
    %c0_9 = arith.constant 0 : index
    %c0_10 = arith.constant 0 : index
    %8 = vector.load %arg2[%c0_9, %c0_10] : memref<5x256xf32, #tpu.memory_space<vmem>>, vector<5x256xf32>
    %9 = vector.extract_strided_slice %8 {offsets = [0, 0], sizes = [1, 256], strides = [1, 1]} : vector<5x256xf32> to vector<1x256xf32>
    %10 = vector.extract_strided_slice %8 {offsets = [1, 0], sizes = [1, 256], strides = [1, 1]} : vector<5x256xf32> to vector<1x256xf32>
    %11 = vector.extract_strided_slice %8 {offsets = [2, 0], sizes = [1, 256], strides = [1, 1]} : vector<5x256xf32> to vector<1x256xf32>
    %12 = vector.extract_strided_slice %8 {offsets = [3, 0], sizes = [1, 256], strides = [1, 1]} : vector<5x256xf32> to vector<1x256xf32>
    %13 = vector.extract_strided_slice %8 {offsets = [4, 0], sizes = [1, 256], strides = [1, 1]} : vector<5x256xf32> to vector<1x256xf32>
    %c0_11 = arith.constant 0 : index
    %c0_12 = arith.constant 0 : index
    %c0_13 = arith.constant 0 : index
    %14 = vector.load %arg1[%c0_11, %c0_12, %c0_13] : memref<1x4x256xf32, #tpu.memory_space<vmem>>, vector<1x4x256xf32>
    %15 = vector.shape_cast %14 : vector<1x4x256xf32> to vector<4x256xf32>
    %cst = arith.constant dense<0.000000e+00> : vector<4xf32>
    %16 = vector.multi_reduction <add>, %15, %cst [1] : vector<4x256xf32> to vector<4xf32>
    %17 = vector.shape_cast %16 : vector<4xf32> to vector<4x1xf32>
    %cst_14 = arith.constant dense<0.000000e+00> : vector<1xf32>
    %18 = vector.multi_reduction <add>, %17, %cst_14 [0] : vector<4x1xf32> to vector<1xf32>
    %19 = vector.shape_cast %18 : vector<1xf32> to vector<1x1xf32>
    %cst_15 = arith.constant 9.765625E-4 : f32
    %20 = vector.broadcast %cst_15 : f32 to vector<1x1xf32>
    %21 = arith.mulf %19, %20 : vector<1x1xf32>
    %22 = vector.broadcast %21 : vector<1x1xf32> to vector<4x256xf32>
    %23 = arith.subf %15, %22 : vector<4x256xf32>
    %24 = arith.mulf %23, %23 : vector<4x256xf32>
    %cst_16 = arith.constant dense<0.000000e+00> : vector<4xf32>
    %25 = vector.multi_reduction <add>, %24, %cst_16 [1] : vector<4x256xf32> to vector<4xf32>
    %26 = vector.shape_cast %25 : vector<4xf32> to vector<4x1xf32>
    %cst_17 = arith.constant dense<0.000000e+00> : vector<1xf32>
    %27 = vector.multi_reduction <add>, %26, %cst_17 [0] : vector<4x1xf32> to vector<1xf32>
    %28 = vector.shape_cast %27 : vector<1xf32> to vector<1x1xf32>
    %cst_18 = arith.constant 0.000000e+00 : f32
    %29 = vector.broadcast %cst_18 : f32 to vector<1x1xf32>
    %30 = arith.mulf %29, %21 : vector<1x1xf32>
    %31 = arith.mulf %30, %21 : vector<1x1xf32>
    %32 = arith.subf %28, %31 : vector<1x1xf32>
    %cst_19 = arith.constant 9.765625E-4 : f32
    %33 = vector.broadcast %cst_19 : f32 to vector<1x1xf32>
    %34 = arith.mulf %32, %33 : vector<1x1xf32>
    %cst_20 = arith.constant 0.000000e+00 : f32
    %35 = vector.broadcast %cst_20 : f32 to vector<1x1xf32>
    %36 = arith.maximumf %34, %35 : vector<1x1xf32>
    %cst_21 = arith.constant 9.99999974E-6 : f32
    %37 = vector.broadcast %cst_21 : f32 to vector<1x1xf32>
    %38 = arith.addf %36, %37 : vector<1x1xf32>
    %39 = math.rsqrt %38 : vector<1x1xf32>
    %40 = vector.broadcast %39 : vector<1x1xf32> to vector<4x1xf32>
    %41 = arith.mulf %40, %0 : vector<4x1xf32>
    %42 = vector.broadcast %41 : vector<4x1xf32> to vector<4x256xf32>
    %43 = arith.mulf %23, %42 : vector<4x256xf32>
    %44 = vector.broadcast %1 : vector<4x1xf32> to vector<4x256xf32>
    %45 = arith.addf %43, %44 : vector<4x256xf32>
    %46 = vector.extract_strided_slice %45 {offsets = [0, 255], sizes = [4, 1], strides = [1, 1]} : vector<4x256xf32> to vector<4x1xf32>
    %47 = vector.extract_strided_slice %45 {offsets = [0, 0], sizes = [4, 255], strides = [1, 1]} : vector<4x256xf32> to vector<4x255xf32>
    %48 = tpu.concatenate %46, %47 in 1 : vector<4x1xf32>, vector<4x255xf32> -> vector<4x256xf32>
    %49 = vector.extract_strided_slice %45 {offsets = [0, 1], sizes = [4, 255], strides = [1, 1]} : vector<4x256xf32> to vector<4x255xf32>
    %50 = vector.extract_strided_slice %45 {offsets = [0, 0], sizes = [4, 1], strides = [1, 1]} : vector<4x256xf32> to vector<4x1xf32>
    %51 = tpu.concatenate %49, %50 in 1 : vector<4x255xf32>, vector<4x1xf32> -> vector<4x256xf32>
    %52 = vector.broadcast %9 : vector<1x256xf32> to vector<4x256xf32>
    %53 = arith.mulf %52, %48 : vector<4x256xf32>
    %54 = arith.addf %53, %45 : vector<4x256xf32>
    %55 = vector.broadcast %10 : vector<1x256xf32> to vector<4x256xf32>
    %56 = arith.mulf %55, %51 : vector<4x256xf32>
    %57 = arith.addf %54, %56 : vector<4x256xf32>
    %58 = vector.extract_strided_slice %57 {offsets = [0, 240], sizes = [4, 16], strides = [1, 1]} : vector<4x256xf32> to vector<4x16xf32>
    %59 = vector.extract_strided_slice %57 {offsets = [0, 0], sizes = [4, 240], strides = [1, 1]} : vector<4x256xf32> to vector<4x240xf32>
    %60 = tpu.concatenate %58, %59 in 1 : vector<4x16xf32>, vector<4x240xf32> -> vector<4x256xf32>
    %61 = vector.extract_strided_slice %57 {offsets = [0, 16], sizes = [4, 240], strides = [1, 1]} : vector<4x256xf32> to vector<4x240xf32>
    %62 = vector.extract_strided_slice %57 {offsets = [0, 0], sizes = [4, 16], strides = [1, 1]} : vector<4x256xf32> to vector<4x16xf32>
    %63 = tpu.concatenate %61, %62 in 1 : vector<4x240xf32>, vector<4x16xf32> -> vector<4x256xf32>
    %64 = vector.broadcast %11 : vector<1x256xf32> to vector<4x256xf32>
    %65 = arith.mulf %64, %60 : vector<4x256xf32>
    %66 = arith.addf %65, %57 : vector<4x256xf32>
    %67 = vector.broadcast %12 : vector<1x256xf32> to vector<4x256xf32>
    %68 = arith.mulf %67, %63 : vector<4x256xf32>
    %69 = arith.addf %66, %68 : vector<4x256xf32>
    %70 = vector.broadcast %13 : vector<1x256xf32> to vector<4x256xf32>
    %71 = arith.mulf %69, %70 : vector<4x256xf32>
    %72 = arith.subf %71, %45 : vector<4x256xf32>
    %73 = vector.broadcast %2 : vector<4x1xf32> to vector<4x256xf32>
    %74 = arith.mulf %73, %72 : vector<4x256xf32>
    %75 = arith.addf %15, %74 : vector<4x256xf32>
    %cst_22 = arith.constant dense<0.000000e+00> : vector<4xf32>
    %76 = vector.multi_reduction <add>, %75, %cst_22 [1] : vector<4x256xf32> to vector<4xf32>
    %77 = vector.shape_cast %76 : vector<4xf32> to vector<4x1xf32>
    %cst_23 = arith.constant dense<0.000000e+00> : vector<1xf32>
    %78 = vector.multi_reduction <add>, %77, %cst_23 [0] : vector<4x1xf32> to vector<1xf32>
    %79 = vector.shape_cast %78 : vector<1xf32> to vector<1x1xf32>
    %cst_24 = arith.constant 9.765625E-4 : f32
    %80 = vector.broadcast %cst_24 : f32 to vector<1x1xf32>
    %81 = arith.mulf %79, %80 : vector<1x1xf32>
    %82 = vector.broadcast %81 : vector<1x1xf32> to vector<4x256xf32>
    %83 = arith.subf %75, %82 : vector<4x256xf32>
    %84 = arith.mulf %83, %83 : vector<4x256xf32>
    %cst_25 = arith.constant dense<0.000000e+00> : vector<4xf32>
    %85 = vector.multi_reduction <add>, %84, %cst_25 [1] : vector<4x256xf32> to vector<4xf32>
    %86 = vector.shape_cast %85 : vector<4xf32> to vector<4x1xf32>
    %cst_26 = arith.constant dense<0.000000e+00> : vector<1xf32>
    %87 = vector.multi_reduction <add>, %86, %cst_26 [0] : vector<4x1xf32> to vector<1xf32>
    %88 = vector.shape_cast %87 : vector<1xf32> to vector<1x1xf32>
    %cst_27 = arith.constant 0.000000e+00 : f32
    %89 = vector.broadcast %cst_27 : f32 to vector<1x1xf32>
    %90 = arith.mulf %89, %81 : vector<1x1xf32>
    %91 = arith.mulf %90, %81 : vector<1x1xf32>
    %92 = arith.subf %88, %91 : vector<1x1xf32>
    %cst_28 = arith.constant 9.765625E-4 : f32
    %93 = vector.broadcast %cst_28 : f32 to vector<1x1xf32>
    %94 = arith.mulf %92, %93 : vector<1x1xf32>
    %cst_29 = arith.constant 0.000000e+00 : f32
    %95 = vector.broadcast %cst_29 : f32 to vector<1x1xf32>
    %96 = arith.maximumf %94, %95 : vector<1x1xf32>
    %cst_30 = arith.constant 9.99999974E-6 : f32
    %97 = vector.broadcast %cst_30 : f32 to vector<1x1xf32>
    %98 = arith.addf %96, %97 : vector<1x1xf32>
    %99 = math.rsqrt %98 : vector<1x1xf32>
    %100 = vector.broadcast %99 : vector<1x1xf32> to vector<4x1xf32>
    %101 = arith.mulf %100, %3 : vector<4x1xf32>
    %102 = vector.broadcast %101 : vector<4x1xf32> to vector<4x256xf32>
    %103 = arith.mulf %83, %102 : vector<4x256xf32>
    %104 = vector.broadcast %4 : vector<4x1xf32> to vector<4x256xf32>
    %105 = arith.addf %103, %104 : vector<4x256xf32>
    %c0_31 = arith.constant 0 : index
    %c0_32 = arith.constant 0 : index
    %106 = vector.load %arg5[%c0_31, %c0_32] : memref<16x4xbf16, #tpu.memory_space<vmem>>, vector<16x4xbf16>
    %c0_33 = arith.constant 0 : index
    %c0_34 = arith.constant 0 : index
    %107 = vector.load %arg6[%c0_33, %c0_34] : memref<4x16xbf16, #tpu.memory_space<vmem>>, vector<4x16xbf16>
    %108 = arith.truncf %105 : vector<4x256xf32> to vector<4x256xbf16>
    %cst_35 = arith.constant dense<0.000000e+00> : vector<16x256xf32>
    %109 = tpu.matmul %106, %108, %cst_35 {dimension_numbers = #tpu.dot_dimension_numbers<[1], [0], [0], [1], [0, 0, 1, 1], [], []>} : vector<16x4xbf16>, vector<4x256xbf16>, vector<16x256xf32> -> vector<16x256xf32>
    %110 = vector.broadcast %7 : vector<16x1xf32> to vector<16x256xf32>
    %111 = arith.addf %109, %110 : vector<16x256xf32>
    %cst_36 = arith.constant 5.000000e-01 : f32
    %112 = vector.broadcast %cst_36 : f32 to vector<16x256xf32>
    %113 = arith.mulf %112, %111 : vector<16x256xf32>
    %cst_37 = arith.constant 0.707106769 : f32
    %114 = vector.broadcast %cst_37 : f32 to vector<16x256xf32>
    %115 = arith.mulf %111, %114 : vector<16x256xf32>
    %cst_38 = arith.constant 0.000000e+00 : f32
    %116 = vector.broadcast %cst_38 : f32 to vector<16x256xf32>
    %117 = arith.cmpf olt, %115, %116 : vector<16x256xf32>
    %cst_39 = arith.constant -1.000000e+00 : f32
    %cst_40 = arith.constant 1.000000e+00 : f32
    %118 = vector.broadcast %cst_39 : f32 to vector<16x256xf32>
    %119 = vector.broadcast %cst_40 : f32 to vector<16x256xf32>
    %120 = arith.select %117, %118, %119 : vector<16x256xi1>, vector<16x256xf32>
    %121 = math.absf %115 : vector<16x256xf32>
    %cst_41 = arith.constant 0.327591091 : f32
    %122 = vector.broadcast %cst_41 : f32 to vector<16x256xf32>
    %123 = arith.mulf %122, %121 : vector<16x256xf32>
    %cst_42 = arith.constant 1.000000e+00 : f32
    %124 = vector.broadcast %cst_42 : f32 to vector<16x256xf32>
    %125 = arith.addf %124, %123 : vector<16x256xf32>
    %cst_43 = arith.constant 1.000000e+00 : f32
    %126 = vector.broadcast %cst_43 : f32 to vector<16x256xf32>
    %127 = arith.divf %126, %125 : vector<16x256xf32>
    %cst_44 = arith.constant 1.06140542 : f32
    %128 = vector.broadcast %cst_44 : f32 to vector<16x256xf32>
    %129 = arith.mulf %128, %127 : vector<16x256xf32>
    %cst_45 = arith.constant -1.45315206 : f32
    %130 = vector.broadcast %cst_45 : f32 to vector<16x256xf32>
    %131 = arith.addf %129, %130 : vector<16x256xf32>
    %132 = arith.mulf %131, %127 : vector<16x256xf32>
    %cst_46 = arith.constant 1.42141378 : f32
    %133 = vector.broadcast %cst_46 : f32 to vector<16x256xf32>
    %134 = arith.addf %132, %133 : vector<16x256xf32>
    %135 = arith.mulf %134, %127 : vector<16x256xf32>
    %cst_47 = arith.constant -0.284496725 : f32
    %136 = vector.broadcast %cst_47 : f32 to vector<16x256xf32>
    %137 = arith.addf %135, %136 : vector<16x256xf32>
    %138 = arith.mulf %137, %127 : vector<16x256xf32>
    %cst_48 = arith.constant 0.254829586 : f32
    %139 = vector.broadcast %cst_48 : f32 to vector<16x256xf32>
    %140 = arith.addf %138, %139 : vector<16x256xf32>
    %141 = arith.mulf %140, %127 : vector<16x256xf32>
    %cst_49 = arith.constant 0.000000e+00 : f32
    %142 = vector.broadcast %cst_49 : f32 to vector<16x256xf32>
    %143 = arith.subf %142, %121 : vector<16x256xf32>
    %144 = arith.mulf %143, %121 : vector<16x256xf32>
    %145 = math.exp %144 : vector<16x256xf32>
    %146 = arith.mulf %141, %145 : vector<16x256xf32>
    %cst_50 = arith.constant 1.000000e+00 : f32
    %147 = vector.broadcast %cst_50 : f32 to vector<16x256xf32>
    %148 = arith.subf %147, %146 : vector<16x256xf32>
    %149 = arith.mulf %120, %148 : vector<16x256xf32>
    %cst_51 = arith.constant 1.000000e+00 : f32
    %150 = vector.broadcast %cst_51 : f32 to vector<16x256xf32>
    %151 = arith.addf %150, %149 : vector<16x256xf32>
    %152 = arith.mulf %113, %151 : vector<16x256xf32>
    %153 = arith.truncf %152 : vector<16x256xf32> to vector<16x256xbf16>
    %cst_52 = arith.constant dense<0.000000e+00> : vector<4x256xf32>
    %154 = tpu.matmul %107, %153, %cst_52 {dimension_numbers = #tpu.dot_dimension_numbers<[1], [0], [0], [1], [0, 0, 1, 1], [], []>} : vector<4x16xbf16>, vector<16x256xbf16>, vector<4x256xf32> -> vector<4x256xf32>
    %155 = vector.broadcast %6 : vector<4x1xf32> to vector<4x256xf32>
    %156 = arith.addf %154, %155 : vector<4x256xf32>
    %157 = vector.broadcast %5 : vector<4x1xf32> to vector<4x256xf32>
    %158 = arith.mulf %157, %156 : vector<4x256xf32>
    %159 = arith.addf %75, %158 : vector<4x256xf32>
    %c0_53 = arith.constant 0 : index
    %c0_54 = arith.constant 0 : index
    %c0_55 = arith.constant 0 : index
    %160 = vector.load %arg7[%c0_53, %c0_54, %c0_55] : memref<1x4x256xf32, #tpu.memory_space<vmem>>, vector<1x4x256xf32>
    %161 = vector.shape_cast %160 : vector<1x4x256xf32> to vector<4x256xf32>
    %162 = vector.shape_cast %159 : vector<4x256xf32> to vector<1x4x256xf32>
    tpu.vector_store %arg7[%c0_53, %c0_54, %c0_55], %162 {strides = array<i32>} : memref<1x4x256xf32, #tpu.memory_space<vmem>>, vector<1x4x256xf32>,
    return
  }
  func.func @transform_0(%arg0: i32) -> (i32, i32, i32) {
    %c0_i32 = arith.constant 0 : i32
    %c0_i32_0 = arith.constant 0 : i32
    %c0_i32_1 = arith.constant 0 : i32
    return %arg0, %c0_i32, %c0_i32_0 : i32, i32, i32
  }
  func.func @transform_1(%arg0: i32) -> (i32, i32) {
    %c0_i32 = arith.constant 0 : i32
    %c0_i32_0 = arith.constant 0 : i32
    %c0_i32_1 = arith.constant 0 : i32
    return %c0_i32, %c0_i32_0 : i32, i32
  }
  func.func @transform_2(%arg0: i32) -> (i32, i32) {
    %c0_i32 = arith.constant 0 : i32
    %c0_i32_0 = arith.constant 0 : i32
    %c0_i32_1 = arith.constant 0 : i32
    return %c0_i32, %c0_i32_0 : i32, i32
  }
  func.func @transform_3(%arg0: i32) -> (i32, i32) {
    %c0_i32 = arith.constant 0 : i32
    %c0_i32_0 = arith.constant 0 : i32
    %c0_i32_1 = arith.constant 0 : i32
    return %c0_i32, %c0_i32_0 : i32, i32
  }
  func.func @transform_4(%arg0: i32) -> (i32, i32) {
    %c0_i32 = arith.constant 0 : i32
    %c0_i32_0 = arith.constant 0 : i32
    %c0_i32_1 = arith.constant 0 : i32
    return %c0_i32, %c0_i32_0 : i32, i32
  }
  func.func @transform_5(%arg0: i32) -> (i32, i32) {
    %c0_i32 = arith.constant 0 : i32
    %c0_i32_0 = arith.constant 0 : i32
    %c0_i32_1 = arith.constant 0 : i32
    return %c0_i32, %c0_i32_0 : i32, i32
  }
  func.func @transform_6(%arg0: i32) -> (i32, i32, i32) {
    %c0_i32 = arith.constant 0 : i32
    %c0_i32_0 = arith.constant 0 : i32
    %c0_i32_1 = arith.constant 0 : i32
    return %arg0, %c0_i32, %c0_i32_0 : i32, i32, i32
  }
}

</mosaic_0001>

<bundles_post_ra>
// kernel: tpu_custom_call.1
= control target key start
LH: loop header
LB: loop body
LE: loop exit
PB: predicated region body
PF: predicated region fallthrough
CT: control target
= control target key end

     0   :  { %11 = vsyncpa [#allocation4], 0  ;;  %s1379_s0 = inlined_call_operand.vmem [shape: f32[2,4,256], index: 0, kind: input, shape index: {}]   ;;  %s1380_s1 = inlined_call_operand.hbm [shape: f32[5,256], index: 1, kind: input, shape index: {}]   ;;  %s1381_s2 = inlined_call_operand.vmem [shape: f32[4,7], index: 2, kind: input, shape index: {}]   ;;  %s1382_s3 = inlined_call_operand.vmem [shape: f32[16,1], index: 3, kind: input, shape index: {}]   ;;  %s1383_s4 = inlined_call_operand.vmem [shape: bf16[16,4], index: 4, kind: input, shape index: {}]   ;;  %s1384_s5 = inlined_call_operand.vmem [shape: bf16[4,16], index: 5, kind: input, shape index: {}]   ;;  %s1385_s6 = inlined_call_operand.hbm [shape: f32[2,4,256], index: 6, kind: output, shape index: {}]  }
   0x1   :  { %12 = vsyncpa [#allocation5], 0 }
   0x2   :  { %14 = vsyncpa [#allocation5 + $0x1], 0  ;;  %s1158_s21 = smov 0   ;;  %s1160_s22 = smov 0  }
   0x3   :  { %s1162_s23 = smov 0   ;;  %s1164_s24 = smov 0  }
   0x4 LB: > { %s1179_s25 = sadd.s32 4294967295, %s1107_s24   ;;  %s894_s26 = sadd.s32 4294967294, %s1107_s24   ;;  %s1107_s24 = sphi %s1164_s24, %s1391_s24   ;;  %s1103_s23 = sphi %s1162_s23, %s1390_s23   ;;  %s1099_s22 = sphi %s1160_s22, %s1389_s22   ;;  %s1095_s21 = sphi %s1158_s21, %s1388_s21  }
   0x5   : > { %s1183_s27 = sadd.s32 1, %s1107_s24   ;;  %s158_s28 = sadd.s32 1, %s1103_s23 }
   0x6   : > { %s155_s29 = ssub.s32 %s1107_s24, %s1183_s27  ;;  %p168_p0 = scmp.ne.s32.totalorder %s1103_s23, %s1099_s22 }
   0x7   : > { %p156_p1 = scmp.eq.s32.totalorder %s155_s29, 0  ;;  %p169_p2 = scmp.eq.s32.totalorder %s1179_s25, 1 }
   0x8   : > { %p174_p3 = scmp.ne.s32.totalorder %s1099_s22, %s1095_s21  ;;  %p175_p4 = scmp.eq.s32.totalorder %s894_s26, 1 }
   0x9   : > { %s1194_s30 = scalar_select %p156_p1, %s1103_s23, %s158_s28  }
   0xa   : > { %p1196_p5 = por %p169_p2, %p168_p0  ;;  %p1200_p6 = por %p175_p4, %p174_p3 }
   0xb   : > { %p895_p7 = scmp.ge.s32.totalorder %s1107_s24, 1  ;;  %p182_p8 = scmp.lt.s32.totalorder %s1107_s24, 3 }
   0xc   : > { %p933_p9 = scmp.eq.s32.totalorder %s1179_s25, 0  ;;  %s194_s11 = sshll.u32 %s1380_s1, 4  ;;  %s195_s11 = int_to_ptr.hbm [resolvable:$true] %s194_s11 }
   0xd   : > { %p183_p10 = pnand %p895_p7, %p182_p8  ;;  %s1109_s12 = smov [#allocation3]  }
   0xe   : > { %s196_s13 = sshll.u32 %s1109_s12, 4  ;;  %s197_s13 = int_to_ptr.vmem [resolvable:$true] %s196_s13 }
   0xf   : > { %p925_p11 = pneg %p183_p10  ;;  %229 = sbr.rel (%p183_p10) target bundleno = 1548 (0x60c), region = 44 }
  0x11   : > { %p926_p12 = pnand %p933_p9, %p925_p11 }
  0x13   : > { %928 = dma.hbm_to_vmem [thread:$0]  (!%p926_p12), %s195_s11, 256, %s197_s13, [#allocation4]  }
  0x14   : > { %1086 = dma.done.wait (%p933_p9), [#allocation4], 256  }
  0x15   : > { %1088 = vsyncadd (%p933_p9), [#allocation4], 4294967040  ;;  %p260_p13 = scmp.lt.s32.totalorder %s1179_s25, 1  ;;  %vm278_vm0 = vcmask 1043456   ;;  %v1110_v22 = vmov 0   ;;  %v1111_v46 = vmov 1  }
  0x16   : > { %982 = vset.pattern.permute.xlu1 %v1110_v22  ;;  %v1229_v42 = vld [vmem:[%s1381_s2] sm:$0xf]  ;;  %v1112_v47 = vmov 839922192   ;;  %s1113_s26 = smov 1   ;;  %s1114_s28 = smov 127  }
  0x17   : > { %s261_s14 = scalar_select %p260_p13, %s1179_s25, 1  ;;  %v334_v48 = vunpack.c.l.s4 %v1112_v47  ;;  %vm362_vm4 = vcmask 7168   ;;  %vm374_vm5 = vcmask 1039360   ;;  %vm408_vm6 = vcmask 130048  }
  0x18   : > { %s1116_s29 = smov 16   ;;  %s1117_s9 = smov 112   ;;  %vm417_vm7 = vcmask 916480   ;;  %vm563_vm11 = vcmask 1041408   ;;  %vm559_vm12 = vcmask 31744  }
  0x19   : > { %s916_s15 = sshll.u32 %s261_s14, 3  ;;  %v1233_v50 = vunpack.c.0.s8 %v334_v48  ;;  %s918_s20 = sshll.u32 %s1179_s25, 3 }
  0x1a   : > { %s264_s18 = scalar_lea.vmem %s1379_s0, %s916_s15  ;;  %s1061_s16 = scalar_lea.hbm %s1385_s6, 16 }
  0x1b   : > { %v1215_v0 = vld [vmem:[%s264_s18] sm:$0xff]  ;;  %s257_s18 = sand.u32 1, %s1099_s22  }
  0x1c   : > { %273 = vst [vmem:[#allocation1] ss:$2 sm:$0xff] %v1215_v0  ;;  %s900_s19 = sshll.u32 %s257_s18, 3  ;;  %s807_s25 = scalar_lea.sflag [#allocation5], %s257_s18 }
  0x23   : > { %v274_v1 = vld.sshfl [vmem:[#allocation1] sm:$0xff pattern:$0x75316420]  ;;  %v275_v2 = vld.sshfl [vmem:[#allocation1 + $0x8] sm:$0xff pattern:$0x75316420] }
  0x24   : > { %v279_v3 = vsel %vm278_vm0, %v274_v1, 0.0  ;;  %v280_v4 = vsel %vm278_vm0, %v275_v2, 0.0  ;;  %v1115_v2 = vmov 2  }
  0x25   : > { %v281_v5 = vadd.f32 %v280_v4, %v279_v3  ;;  %v269_v4 = vld [vmem:[#allocation3] sm:$0x1f] }
  0x27   : > { %282 = vadd.xlane.f32.xlu0 %v281_v5  ;;  %v384_v5 = vperm.slane %v269_v4, 0 }
  0x9a   : > { %v283_v6 = vpop.xlane.xlu0 %282 }
  0x9b   : > { %v284_v7 = vsel %vm278_vm0, %v283_v6, 0.0 }
  0x9c   : > { %v285_v8 = vrot.slane %v284_v7, 4 }
  0x9e   : > { %v286_v9 = vadd.f32 %v285_v8, %v284_v7  ;;  %v395_v8 = vperm.slane %v269_v4, 1 }
  0xa0   : > { %v287_v10 = vrot.slane %v286_v9, 2 }
  0xa2   : > { %v288_v11 = vadd.f32 %v287_v10, %v286_v9  ;;  %v270_v10 = vld [vmem:[#allocation3 + $0x8] sm:$0x1f] }
  0xa4   : > { %v289_v12 = vrot.slane %v288_v11, 1 }
  0xa6   : > { %v290_v13 = vadd.f32 %v289_v12, %v288_v11 }
  0xa8   : > { %v291_v14 = vmul.f32 0.0009765625, %v290_v13 }
  0xaa   : > { %v292_v15 = vsub.f32 %v1215_v0, %v291_v14  ;;  %v312_v28 = vmul.f32 0.0, %v291_v14 }
  0xac   : > { %v293_v16 = vmul.f32 %v292_v15, %v292_v15  ;;  %v313_v31 = vmul.f32 %v312_v28, %v291_v14 }
  0xae   : > { %295 = vst [vmem:[#allocation1] ss:$2 sm:$0xff] %v293_v16 }
  0xb5   : > { %v296_v17 = vld.sshfl [vmem:[#allocation1] sm:$0xff pattern:$0x75316420]  ;;  %v297_v18 = vld.sshfl [vmem:[#allocation1 + $0x8] sm:$0xff pattern:$0x75316420] }
  0xb6   : > { %v300_v19 = vsel %vm278_vm0, %v296_v17, 0.0  ;;  %v301_v20 = vsel %vm278_vm0, %v297_v18, 0.0 }
  0xb7   : > { %v302_v21 = vadd.f32 %v301_v20, %v300_v19  ;;  %v396_v20 = vperm.slane %v270_v10, 1 }
  0xb9   : > { %303 = vadd.xlane.f32.xlu0 %v302_v21 }
 0x12c   : > { %v304_v23 = vpop.xlane.xlu0 %303 }
 0x12d   : > { %v305_v24 = vsel %vm278_vm0, %v304_v23, 0.0 }
 0x12e   : > { %v306_v25 = vrot.slane %v305_v24, 4 }
 0x130   : > { %v307_v26 = vadd.f32 %v306_v25, %v305_v24 }
 0x132   : > { %v308_v27 = vrot.slane %v307_v26, 2 }
 0x134   : > { %v309_v29 = vadd.f32 %v308_v27, %v307_v26 }
 0x136   : > { %v310_v30 = vrot.slane %v309_v29, 1 }
 0x138   : > { %v311_v32 = vadd.f32 %v310_v30, %v309_v29  ;;  %v423_v29 = vperm.slane %v269_v4, 2  ;;  %v424_v30 = vperm.slane %v270_v10, 2 }
 0x13a   : > { %v314_v33 = vsub.f32 %v311_v32, %v313_v31 }
 0x13c   : > { %v315_v34 = vmul.f32 0.0009765625, %v314_v33 }
 0x13e   : > { %v316_v35 = vmax.f32 %v315_v34, 0.0 }
 0x140   : > { %v317_v36 = vadd.f32 1e-05, %v316_v35  ;;  %v429_v35 = vperm.slane %v269_v4, 3 }
 0x142   : > { %991 = vrsqrt.f32 %v317_v36  ;;  %vm324_vm2 = vweird.f32 %v317_v36 }
 0x148   : > { %v992_v37 = vpop.eup %991 }
 0x149   : > { %v319_v38 = vmul.f32 %v992_v37, %v317_v36  ;;  %vm325_vm1 = vweird.f32 %v992_v37  ;;  %v430_v36 = vperm.slane %v270_v10, 3 }
 0x14a   : > { %vm326_vm3 = vmor %vm324_vm2, %vm325_vm1 }
 0x14b   : > { %v320_v39 = vmul.f32 %v992_v37, %v319_v38 }
 0x14d   : > { %v321_v40 = vmul.f32 0.5, %v320_v39 }
 0x14f   : > { %v322_v41 = vsub.f32 1.5, %v321_v40 }
 0x151   : > { %v323_v43 = vmul.f32 %v992_v37, %v322_v41  ;;  %v435_v41 = vperm.slane %v269_v4, 4 }
 0x153   : > { %v327_v44 = vsel %vm326_vm3, %v992_v37, %v323_v43  ;;  %v436_v43 = vperm.slane %v270_v10, 4 }
 0x154   : > { %v328_v45 = vmul.f32 %v327_v44, %v1229_v42 }
 0x156   : > { %331 = vperm.xlu1 %982, %v328_v45  }
 0x15e   : > { %983 = vset.pattern.permute.xlu1 %v1111_v46 }
 0x15f   : > { %341 = vperm.xlu1 %983, %v1229_v42  }
 0x167   : > { %984 = vset.pattern.permute.xlu1 %v1115_v2 }
 0x1c8   : > { %v332_v49 = vpop.permute.xlu1 %331 }
 0x1c9   : > { %v336_v51 = vperm.slane %v332_v49, %v1233_v50 }
 0x1cb   : > { %v338_v53 = vmul.f32 %v336_v51, %v292_v15  ;;  %v385_v15 = vperm.slane %v270_v10, 0 }
 0x1d1   : > { %v342_v52 = vpop.permute.xlu1 %341 }
 0x1d2   : > { %v346_v54 = vperm.slane %v342_v52, %v1233_v50 }
 0x1d4   : > { %v348_v55 = vadd.f32 %v346_v54, %v338_v53 }
 0x1d6   : > { %350 = vst [vmem:[#allocation1] ss:$2 sm:$0xff] %v348_v55 }
 0x1dd   : > { %v351_v56 = vld.sshfl [vmem:[#allocation1 + $0x8] sm:$0xff pattern:$0x75316420] }
 0x1de   : > { %352 = vrot.lane.b32.xlu2 %v351_v56, %s1113_s26  ;;  %355 = vst [vmem:[#allocation1] ss:$2 sm:$0xff] %v348_v55 }
 0x1e5   : > { %v357_v57 = vld.sshfl [vmem:[#allocation1 + $0x8] sm:$0xff pattern:$0x75316420]  ;;  %v356_v58 = vld.sshfl [vmem:[#allocation1] sm:$0xff pattern:$0x75316420] }
 0x1e6   : > { %360 = vrot.lane.b32.xlu0 %v357_v57, %s1113_s26  ;;  %358 = vrot.lane.b32.xlu2 %v356_v58, %s1113_s26  ;;  %367 = vst [vmem:[#allocation1] ss:$2 sm:$0xff] %v348_v55 }
 0x1ed   : > { %v369_v59 = vld.sshfl [vmem:[#allocation1 + $0x8] sm:$0xff pattern:$0x75316420]  ;;  %v368_v60 = vld.sshfl [vmem:[#allocation1] sm:$0xff pattern:$0x75316420] }
 0x1ee   : > { %372 = vrot.lane.b32.xlu2 %v369_v59, %s1114_s28  ;;  %370 = vrot.lane.b32.xlu1 %v368_v60, %s1114_s28  ;;  %378 = vst [vmem:[#allocation1] ss:$2 sm:$0xff] %v348_v55 }
 0x1f5   : > { %v379_v61 = vld.sshfl [vmem:[#allocation1] sm:$0xff pattern:$0x75316420] }
 0x1f6   : > { %380 = vrot.lane.b32.xlu1 %v379_v61, %s1114_s28  ;;  %388 = vst [vmem:[#allocation1] ss:$2 sm:$0xff] %v348_v55 }
 0x1fd   : > { %v389_v62 = vld.sshfl [vmem:[#allocation1] sm:$0xff pattern:$0x75316420]  ;;  %v390_v63 = vld.sshfl [vmem:[#allocation1 + $0x8] sm:$0xff pattern:$0x75316420] }
 0x1fe   : > { %439 = vst [vmem:[#allocation1] ss:$2 sm:$0xff] %v348_v55 }
 0x205   : > { %v440_v53 = vld.sshfl [vmem:[#allocation1] sm:$0xff pattern:$0x75316420]  ;;  %v441_v54 = vld.sshfl [vmem:[#allocation1 + $0x8] sm:$0xff pattern:$0x75316420] }
 0x238   : > { %v353_v1 = vpop.permute.xlu2 %352 }
 0x240   : > { %v359_v3 = vpop.permute.xlu2 %358 }
 0x241   : > { %v366_v6 = vsel %vm362_vm4, %v353_v1, %v359_v3 }
 0x242   : > { %v386_v7 = vmul.f32 %v384_v5, %v366_v6 }
 0x244   : > { %v393_v14 = vadd.f32 %v389_v62, %v386_v7 }
 0x248   : > { %v373_v9 = vpop.permute.xlu2 %372 }
 0x258   : > { %v361_v11 = vpop.permute.xlu0 %360 }
 0x259   : > { %v363_v17 = vsel %vm362_vm4, %v359_v3, %v361_v11 }
 0x25a   : > { %v387_v19 = vmul.f32 %v385_v15, %v363_v17 }
 0x25c   : > { %v394_v24 = vadd.f32 %v390_v63, %v387_v19 }
 0x260   : > { %v371_v12 = vpop.permute.xlu1 %370 }
 0x261   : > { %v375_v13 = vsel %vm374_vm5, %v371_v12, %v373_v9 }
 0x262   : > { %v397_v16 = vmul.f32 %v395_v8, %v375_v13 }
 0x264   : > { %v399_v18 = vadd.f32 %v397_v16, %v393_v14 }
 0x266   : > { %406 = vrot.lane.b32.xlu1 %v399_v18, %s1116_s29 }
 0x268   : > { %v381_v21 = vpop.permute.xlu1 %380 }
 0x269   : > { %v383_v23 = vsel %vm374_vm5, %v373_v9, %v381_v21 }
 0x26a   : > { %v398_v25 = vmul.f32 %v396_v20, %v383_v23  ;;  %v1118_v20 = vmov 3  }
 0x26c   : > { %v400_v26 = vadd.f32 %v398_v25, %v394_v24 }
 0x26e   : > { %415 = vrot.lane.b32.xlu0 %v400_v26, %s1117_s9  ;;  %402 = vrot.lane.b32.xlu2 %v400_v26, %s1116_s29  ;;  %s818_s29 = scalar_lea.hbm %s1385_s6, %s918_s20 }
 0x26f   : > { %447 = vperm.xlu1 %984, %v1229_v42   ;;  %s822_s11 = sshll.u32 %s818_s29, 4  ;;  %s823_s11 = int_to_ptr.hbm [resolvable:$true] %s822_s11 }
 0x270   : > { %s1055_s12 = sshra.s32 %s823_s11, 4  ;;  %s1056_s12 = int_to_ptr.hbm [resolvable:$true] %s1055_s12 }
 0x271   : > { %s1057_s13 = scalar_lea.hbm %s1056_s12, 8  ;;  %p1062_p3 = scmp.lt.s32.totalorder %s1056_s12, %s1385_s6 }
 0x272   : > { %p1058_p0 = scmp.ne.s32.totalorder %s1056_s12, %s1057_s13  ;;  %p1063_p4 = scmp.lt.s32.totalorder %s1061_s16, %s1057_s13 }
 0x274   : > { %p1059_p1 = pnand %p1058_p0, %p1196_p5  ;;  %p1064_p7 = por %p1063_p4, %p1062_p3 }
 0x276   : > { %413 = vrot.lane.b32.xlu2 %v399_v18, %s1117_s9  ;;  %s259_s9 = scalar_lea.vmem [#allocation6], %s900_s19  ;;  %p1060_p2 = pneg %p1059_p1 }
 0x277   : > { %985 = vset.pattern.permute.xlu1 %v1118_v20  ;;  %s820_s10 = sshll.u32 %s259_s9, 4  ;;  %s821_s10 = int_to_ptr.vmem [resolvable:$true] %s820_s10 }
 0x278   : > { %p1065_p8 = pnand %p1064_p7, %p1060_p2 }
 0x2c8   : > { %v403_v27 = vpop.permute.xlu2 %402 }
 0x2d0   : > { %v414_v37 = vpop.permute.xlu2 %413 }
 0x2d8   : > { %v407_v28 = vpop.permute.xlu1 %406 }
 0x2d9   : > { %v409_v31 = vsel %vm408_vm6, %v407_v28, %v403_v27  ;;  %v412_v32 = vsel %vm408_vm6, %v403_v27, %v407_v28 }
 0x2da   : > { %v425_v33 = vmul.f32 %v423_v29, %v412_v32  ;;  %v426_v34 = vmul.f32 %v424_v30, %v409_v31 }
 0x2dc   : > { %v427_v44 = vadd.f32 %v425_v33, %v399_v18  ;;  %v428_v45 = vadd.f32 %v426_v34, %v400_v26 }
 0x2e0   : > { %v416_v38 = vpop.permute.xlu0 %415 }
 0x2e1   : > { %v418_v39 = vsel %vm417_vm7, %v414_v37, %v416_v38  ;;  %v422_v40 = vsel %vm417_vm7, %v416_v38, %v414_v37  ;;  %v448_v55 = vpop.permute.xlu1 %447 }
 0x2e2   : > { %v431_v46 = vmul.f32 %v429_v35, %v418_v39  ;;  %v432_v47 = vmul.f32 %v430_v36, %v422_v40 }
 0x2e4   : > { %v433_v48 = vadd.f32 %v431_v46, %v427_v44  ;;  %v434_v49 = vadd.f32 %v432_v47, %v428_v45  ;;  %v1119_v45 = vmov 4   ;;  %v267_v46 = vld [vmem:[%s1382_s3] sm:$0xff] }
 0x2e6   : > { %v437_v51 = vmul.f32 %v435_v41, %v433_v48  ;;  %v438_v52 = vmul.f32 %v436_v43, %v434_v49  ;;  %v268_v48 = vld [vmem:[%s1382_s3 + $0x8] sm:$0xff] }
 0x2e8   : > { %v444_v56 = vsub.f32 %v437_v51, %v440_v53  ;;  %v445_v57 = vsub.f32 %v438_v52, %v441_v54 }
 0x2ea   : > { %v451_v58 = vmul.f32 %v448_v55, %v445_v57  ;;  %v450_v59 = vmul.f32 %v448_v55, %v444_v56 }
 0x2ec   : > { %v454_v60 = vrot.slane %v451_v58, 4 }
 0x2ee   : > { %v455_v61 = vsel %vm278_vm0, %v450_v59, %v454_v60  ;;  %v917_v60 = vld [vmem:[%s1383_s4] sm:$0xff] }
 0x2ef   : > { %v1244_v62 = vadd.f32 %v455_v61, %v1215_v0 }
 0x2f1   : > { %459 = vst [vmem:[#allocation1] ss:$2 sm:$0xff] %v1244_v62 }
 0x2f8   : > { %v460_v63 = vld.sshfl [vmem:[#allocation1] sm:$0xff pattern:$0x75316420]  ;;  %v461_v1 = vld.sshfl [vmem:[#allocation1 + $0x8] sm:$0xff pattern:$0x75316420] }
 0x2f9   : > { %v464_v2 = vsel %vm278_vm0, %v460_v63, 0.0  ;;  %v465_v3 = vsel %vm278_vm0, %v461_v1, 0.0 }
 0x2fa   : > { %v466_v4 = vadd.f32 %v465_v3, %v464_v2 }
 0x2fc   : > { %467 = vadd.xlane.f32.xlu2 %v466_v4 }
 0x36f   : > { %v468_v5 = vpop.xlane.xlu2 %467 }
 0x370   : > { %v469_v6 = vsel %vm278_vm0, %v468_v5, 0.0 }
 0x371   : > { %v470_v7 = vrot.slane %v469_v6, 4 }
 0x373   : > { %v471_v8 = vadd.f32 %v470_v7, %v469_v6 }
 0x375   : > { %v472_v9 = vrot.slane %v471_v8, 2 }
 0x377   : > { %v473_v10 = vadd.f32 %v472_v9, %v471_v8 }
 0x379   : > { %v474_v11 = vrot.slane %v473_v10, 1 }
 0x37b   : > { %v475_v0 = vadd.f32 %v474_v11, %v473_v10 }
 0x37d   : > { %v476_v12 = vmul.f32 0.0009765625, %v475_v0 }
 0x37f   : > { %v477_v13 = vsub.f32 %v1244_v62, %v476_v12  ;;  %v497_v27 = vmul.f32 0.0, %v476_v12 }
 0x381   : > { %v478_v14 = vmul.f32 %v477_v13, %v477_v13  ;;  %v498_v30 = vmul.f32 %v497_v27, %v476_v12 }
 0x383   : > { %480 = vst [vmem:[#allocation1] ss:$2 sm:$0xff] %v478_v14 }
 0x38a   : > { %v481_v15 = vld.sshfl [vmem:[#allocation1] sm:$0xff pattern:$0x75316420]  ;;  %v482_v16 = vld.sshfl [vmem:[#allocation1 + $0x8] sm:$0xff pattern:$0x75316420] }
 0x38b   : > { %v485_v17 = vsel %vm278_vm0, %v481_v15, 0.0  ;;  %v486_v18 = vsel %vm278_vm0, %v482_v16, 0.0 }
 0x38c   : > { %v487_v19 = vadd.f32 %v486_v18, %v485_v17 }
 0x38e   : > { %488 = vadd.xlane.f32.xlu0 %v487_v19 }
 0x401   : > { %v489_v21 = vpop.xlane.xlu0 %488 }
 0x402   : > { %v490_v23 = vsel %vm278_vm0, %v489_v21, 0.0 }
 0x403   : > { %v491_v24 = vrot.slane %v490_v23, 4 }
 0x405   : > { %v492_v25 = vadd.f32 %v491_v24, %v490_v23 }
 0x407   : > { %v493_v26 = vrot.slane %v492_v25, 2 }
 0x409   : > { %v494_v28 = vadd.f32 %v493_v26, %v492_v25 }
 0x40b   : > { %v495_v29 = vrot.slane %v494_v28, 1 }
 0x40d   : > { %v496_v31 = vadd.f32 %v495_v29, %v494_v28 }
 0x40f   : > { %v499_v32 = vsub.f32 %v496_v31, %v498_v30 }
 0x411   : > { %v500_v33 = vmul.f32 0.0009765625, %v499_v32 }
 0x413   : > { %v501_v34 = vmax.f32 %v500_v33, 0.0 }
 0x415   : > { %v502_v35 = vadd.f32 1e-05, %v501_v34 }
 0x417   : > { %993 = vrsqrt.f32 %v502_v35  ;;  %vm509_vm9 = vweird.f32 %v502_v35 }
 0x41d   : > { %v994_v36 = vpop.eup %993 }
 0x41e   : > { %v504_v37 = vmul.f32 %v994_v36, %v502_v35  ;;  %vm510_vm8 = vweird.f32 %v994_v36 }
 0x41f   : > { %vm511_vm10 = vmor %vm509_vm9, %vm510_vm8 }
 0x420   : > { %v505_v38 = vmul.f32 %v994_v36, %v504_v37 }
 0x422   : > { %v506_v39 = vmul.f32 0.5, %v505_v38 }
 0x424   : > { %v507_v40 = vsub.f32 1.5, %v506_v39 }
 0x426   : > { %v508_v41 = vmul.f32 %v994_v36, %v507_v40 }
 0x428   : > { %v512_v43 = vsel %vm511_vm10, %v994_v36, %v508_v41 }
 0x429   : > { %v513_v44 = vmul.f32 %v512_v43, %v1229_v42 }
 0x42b   : > { %516 = vperm.xlu1 %985, %v513_v44  }
 0x433   : > { %986 = vset.pattern.permute.xlu1 %v1119_v45 }
 0x434   : > { %525 = vperm.xlu1 %986, %v1229_v42  }
 0x43c   : > { %987 = vset.pattern.permute.xlu1 %v1110_v22 }
 0x43d   : > { %546 = vperm.xlu1 %987, %v267_v46  }
 0x445   : > { %551 = vperm.xlu1 %987, %v268_v48  }
 0x49d   : > { %v517_v47 = vpop.permute.xlu1 %516 }
 0x49e   : > { %v521_v49 = vperm.slane %v517_v47, %v1233_v50 }
 0x4a0   : > { %v523_v52 = vmul.f32 %v521_v49, %v477_v13 }
 0x4a6   : > { %v526_v51 = vpop.permute.xlu1 %525 }
 0x4a7   : > { %v530_v53 = vperm.slane %v526_v51, %v1233_v50 }
 0x4a9   : > { %v532_v54 = vadd.f32 %v530_v53, %v523_v52 }
 0x4ab   : > { %537 = vst [vmem:[#allocation1] ss:$2 sm:$0xff] %v532_v54 }
 0x4af   : > { %v547_v61 = vpop.permute.xlu1 %546 }
 0x4b2   : > { %v538_v22 = vld.sshfl [vmem:[#allocation1] sm:$0xff pattern:$0x75316420]  ;;  %v539_v55 = vld.sshfl [vmem:[#allocation1 + $0x8] sm:$0xff pattern:$0x75316420] }
 0x4b3   : > { %v542_v56 = vpack.c.bf16 %v538_v22, %v538_v22  ;;  %v543_v57 = vpack.c.bf16 %v539_v55, %v539_v55 }
 0x4b5   : > { %v565_v58 = vsel %vm563_vm11, %v542_v56, 0  ;;  %v568_v59 = vsel %vm563_vm11, %v543_v57, 0 }
 0x4b6   : > { %577 = vmatpush.bf16.msra.mxu0 %v565_v58  ;;  %591 = vmatpush.bf16.msra.mxu1 %v568_v59 }
 0x4b7   : > { %v552_v12 = vpop.permute.xlu1 %551 }
 0x4b9   : > { %907 = vmatmul.msk.bf16.vlgmr.msra.gmra.mxu0 %vm559_vm12, %v917_v60  ;;  %908 = vmatmul.msk.bf16.vlgmr.msra.gmra.mxu1 %vm559_vm12, %v917_v60 }
 0x536   : > { %v579_v50 = vpop.f32.mrf.mxu0  ;;  %v593_v63 = vpop.f32.mrf.mxu1 }
 0x537   : > { %v1268_v1 = vadd.f32 %v579_v50, %v547_v61  ;;  %v1270_v2 = vadd.f32 %v593_v63, %v547_v61 }
 0x539   : > { %v1273_v3 = vmul.f32 0.70710677, %v1268_v1  ;;  %v1276_v4 = vmul.f32 0.70710677, %v1270_v2 }
 0x53b   : > { %v614_v5 = vand.u32 2147483647, %v1273_v3  ;;  %v615_v6 = vand.u32 2147483647, %v1276_v4 }
 0x53d   : > { %v618_v7 = vmul.f32 0.3275911, %v614_v5  ;;  %v619_v8 = vmul.f32 0.3275911, %v615_v6  ;;  %v722_v29 = vsub.f32 0.0, %v614_v5  ;;  %v723_v31 = vsub.f32 0.0, %v615_v6 }
 0x53e   : > { %v581_v9 = vpop.f32.mrf.mxu0  ;;  %v595_v10 = vpop.f32.mrf.mxu1 }
 0x53f   : > { %v622_v11 = vadd.f32 1.0, %v618_v7  ;;  %v623_v0 = vadd.f32 1.0, %v619_v8  ;;  %v1280_v13 = vadd.f32 %v581_v9, %v552_v12  ;;  %v1282_v14 = vadd.f32 %v595_v10, %v552_v12 }
 0x540   : > { %v726_v38 = vmul.f32 %v722_v29, %v614_v5  ;;  %v727_v40 = vmul.f32 %v723_v31, %v615_v6 }
 0x541   : > { %995 = vrcp.f32 %v622_v11  ;;  %v1285_v15 = vmul.f32 0.70710677, %v1280_v13  ;;  %v1288_v16 = vmul.f32 0.70710677, %v1282_v14  ;;  %v637_v32 = vand.u32 2147483648, %v622_v11 }
 0x542   : > { %997 = vrcp.f32 %v623_v0  ;;  %v635_v34 = vand.u32 2147483647, %v622_v11  ;;  %v652_v35 = vand.u32 2147483648, %v623_v0  ;;  %v650_v37 = vand.u32 2147483647, %v623_v0 }
 0x543   : > { %v1291_v17 = vand.u32 2147483647, %v1285_v15  ;;  %v1294_v18 = vand.u32 2147483647, %v1288_v16  ;;  %vm631_vm15 = vweird.f32 %v622_v11  ;;  %v638_v41 = vor.u32 1.1754944e-38, %v637_v32 }
 0x544   : > { %vm646_vm2 = vweird.f32 %v623_v0  ;;  %vm636_vm3 = vcmp.eq.f32.partialorder %v635_v34, 8.507059e+37  ;;  %v653_v46 = vor.u32 1.1754944e-38, %v652_v35  ;;  %vm651_vm5 = vcmp.eq.f32.partialorder %v650_v37, 8.507059e+37 }
 0x545   : > { %v620_v19 = vmul.f32 0.3275911, %v1291_v17  ;;  %v621_v21 = vmul.f32 0.3275911, %v1294_v18  ;;  %v730_v52 = vmul.f32 1.442695, %v726_v38 }
 0x546   : > { %v732_v55 = vmul.f32 1.442695, %v727_v40  ;;  %v724_v9 = vsub.f32 0.0, %v1291_v17  ;;  %v1120_v38 = vmov 6  }
 0x547   : > { %v996_v20 = vpop.eup %995  ;;  %v1298_v25 = vadd.f32 1.0, %v620_v19  ;;  %v1300_v27 = vadd.f32 1.0, %v621_v21  ;;  %988 = vset.pattern.permute.xlu1 %v1120_v38 }
 0x548   : > { %v998_v23 = vpop.eup %997  ;;  %v627_v24 = vmul.f32 %v996_v20, %v622_v11  ;;  %vm632_vm13 = vweird.f32 %v996_v20  ;;  %v728_v35 = vmul.f32 %v724_v9, %v1291_v17  ;;  %761 = vperm.xlu1 %988, %v1229_v42  }
 0x549   : > { %v642_v26 = vmul.f32 %v998_v23, %v623_v0  ;;  %999 = vrcp.f32 %v1298_v25  ;;  %vm647_vm14 = vweird.f32 %v998_v23  ;;  %vm633_vm1 = vmor %vm631_vm15, %vm632_vm13  ;;  %v665_v59 = vand.u32 2147483647, %v1298_v25 }
 0x54a   : > { %v628_v28 = vsub.f32 1.0, %v627_v24  ;;  %1001 = vrcp.f32 %v1300_v27  ;;  %vm648_vm4 = vmor %vm646_vm2, %vm647_vm14  ;;  %v667_v60 = vand.u32 2147483648, %v1298_v25  ;;  %v682_v63 = vand.u32 2147483648, %v1300_v27 }
 0x54b   : > { %v643_v30 = vsub.f32 1.0, %v642_v26  ;;  %v680_v8 = vand.u32 2147483647, %v1300_v27  ;;  %vm661_vm9 = vweird.f32 %v1298_v25  ;;  %vm676_vm11 = vweird.f32 %v1300_v27 }
 0x54c   : > { %v629_v33 = vmul.f32 %v996_v20, %v628_v28  ;;  %v668_v0 = vor.u32 1.1754944e-38, %v667_v60  ;;  %vm666_vm12 = vcmp.eq.f32.partialorder %v665_v59, 8.507059e+37  ;;  %v683_v21 = vor.u32 1.1754944e-38, %v682_v63 }
 0x54d   : > { %v644_v36 = vmul.f32 %v998_v23, %v643_v30  ;;  %vm681_vm14 = vcmp.eq.f32.partialorder %v680_v8, 8.507059e+37  ;;  %1003 = vpow2.f32 %v730_v52  ;;  %vm606_vm15 = vcmp.lt.f32.partialorder %v1273_v3, 0.0 }
 0x54e   : > { %v630_v39 = vadd.f32 %v996_v20, %v629_v33  ;;  %1005 = vpow2.f32 %v732_v55  ;;  %vm608_vm2 = vcmp.lt.f32.partialorder %v1285_v15, 0.0 }
 0x54f   : > { %v645_v43 = vadd.f32 %v998_v23, %v644_v36  ;;  %v1000_v44 = vpop.eup %999 }
 0x550   : > { %v634_v45 = vsel %vm633_vm1, %v996_v20, %v630_v39  ;;  %v1002_v47 = vpop.eup %1001  ;;  %v657_v48 = vmul.f32 %v1000_v44, %v1298_v25  ;;  %vm662_vm7 = vweird.f32 %v1000_v44  ;;  %v725_v25 = vsub.f32 0.0, %v1294_v18 }
 0x551   : > { %v1305_v49 = vsel %vm636_vm3, %v638_v41, %v634_v45  ;;  %v649_v51 = vsel %vm648_vm4, %v998_v23, %v645_v43  ;;  %v672_v53 = vmul.f32 %v1002_v47, %v1300_v27  ;;  %vm677_vm8 = vweird.f32 %v1002_v47  ;;  %vm663_vm10 = vmor %vm661_vm9, %vm662_vm7 }
 0x552   : > { %v686_v54 = vmul.f32 1.0614054, %v1305_v49  ;;  %v1309_v22 = vsel %vm651_vm5, %v653_v46, %v649_v51  ;;  %v658_v56 = vsub.f32 1.0, %v657_v48  ;;  %vm678_vm13 = vmor %vm676_vm11, %vm677_vm8  ;;  %v1121_v39 = vmov 5  }
 0x553   : > { %v687_v57 = vmul.f32 1.0614054, %v1309_v22  ;;  %v673_v58 = vsub.f32 1.0, %v672_v53  ;;  %989 = vset.pattern.permute.xlu2 %v1121_v39  ;;  %v729_v40 = vmul.f32 %v725_v25, %v1294_v18  ;;  %990 = vset.pattern.permute.xlu0 %v1121_v39  ;;  %vm607_vm1 = vcmp.lt.f32.partialorder %v1276_v4, 0.0 }
 0x554   : > { %v690_v61 = vadd.f32 -1.4531521, %v686_v54  ;;  %v659_v50 = vmul.f32 %v1000_v44, %v658_v56  ;;  %794 = vperm.xlu2 %989, %v1229_v42   ;;  %v1004_v54 = vpop.eup %1003  ;;  %vm609_vm3 = vcmp.lt.f32.partialorder %v1288_v16, 0.0  ;;  %v601_v16 = vmul.f32 0.5, %v1282_v14 }
 0x555   : > { %v691_v5 = vadd.f32 -1.4531521, %v687_v57  ;;  %v674_v7 = vmul.f32 %v1002_v47, %v673_v58  ;;  %v736_v52 = vmul.f32 1.442695, %v729_v40  ;;  %v1006_v56 = vpop.eup %1005 }
 0x556   : > { %v694_v6 = vmul.f32 %v690_v61, %v1305_v49  ;;  %v660_v10 = vadd.f32 %v1000_v44, %v659_v50 }
 0x557   : > { %v695_v11 = vmul.f32 %v691_v5, %v1309_v22  ;;  %v675_v19 = vadd.f32 %v1002_v47, %v674_v7  ;;  %v1122_v7 = vmov 1.0  }
 0x558   : > { %v698_v12 = vadd.f32 1.4214138, %v694_v6  ;;  %v664_v20 = vsel %vm663_vm10, %v1000_v44, %v660_v10  ;;  %v610_v8 = vsel %vm606_vm15, -1.0, %v1122_v7 }
 0x559   : > { %v699_v23 = vadd.f32 1.4214138, %v695_v11  ;;  %v669_v24 = vsel %vm666_vm12, %v668_v0, %v664_v20  ;;  %v679_v28 = vsel %vm678_vm13, %v1002_v47, %v675_v19  ;;  %v734_v47 = vmul.f32 1.442695, %v728_v35 }
 0x55a   : > { %v702_v26 = vmul.f32 %v698_v12, %v1305_v49  ;;  %v688_v29 = vmul.f32 1.0614054, %v669_v24  ;;  %v684_v30 = vsel %vm681_vm14, %v683_v21, %v679_v28  ;;  %v611_v12 = vsel %vm607_vm1, -1.0, %v1122_v7 }
 0x55b   : > { %v703_v31 = vmul.f32 %v699_v23, %v1309_v22  ;;  %v689_v33 = vmul.f32 1.0614054, %v684_v30  ;;  %1007 = vpow2.f32 %v734_v47  ;;  %v612_v21 = vsel %vm608_vm2, -1.0, %v1122_v7 }
 0x55c   : > { %v706_v32 = vadd.f32 -0.28449672, %v702_v26  ;;  %v692_v34 = vadd.f32 -1.4531521, %v688_v29  ;;  %1009 = vpow2.f32 %v736_v52  ;;  %v598_v29 = vmul.f32 0.5, %v1268_v1 }
 0x55d   : > { %v707_v27 = vadd.f32 -0.28449672, %v703_v31  ;;  %v693_v37 = vadd.f32 -1.4531521, %v689_v33  ;;  %v599_v31 = vmul.f32 0.5, %v1270_v2 }
 0x55e   : > { %v710_v36 = vmul.f32 %v706_v32, %v1305_v49  ;;  %v696_v41 = vmul.f32 %v692_v34, %v669_v24  ;;  %v535_v1 = vld [vmem:[%s1384_s5] sm:$0x3] }
 0x55f   : > { %v711_v43 = vmul.f32 %v707_v27, %v1309_v22  ;;  %v697_v45 = vmul.f32 %v693_v37, %v684_v30 }
 0x560   : > { %v714_v44 = vadd.f32 0.2548296, %v710_v36  ;;  %v700_v17 = vadd.f32 1.4214138, %v696_v41 }
 0x561   : > { %v715_v46 = vadd.f32 0.2548296, %v711_v43  ;;  %v701_v51 = vadd.f32 1.4214138, %v697_v45  ;;  %v1008_v6 = vpop.eup %1007 }
 0x562   : > { %v718_v48 = vmul.f32 %v714_v44, %v1305_v49  ;;  %v704_v53 = vmul.f32 %v700_v17, %v669_v24  ;;  %v1010_v10 = vpop.eup %1009 }
 0x563   : > { %v719_v18 = vmul.f32 %v715_v46, %v1309_v22  ;;  %v705_v55 = vmul.f32 %v701_v51, %v684_v30 }
 0x564   : > { %v708_v57 = vadd.f32 -0.28449672, %v704_v53  ;;  %v738_v58 = vmul.f32 %v1004_v54, %v718_v48 }
 0x565   : > { %v709_v42 = vadd.f32 -0.28449672, %v705_v55  ;;  %v739_v59 = vmul.f32 %v1006_v56, %v719_v18 }
 0x566   : > { %v712_v60 = vmul.f32 %v708_v57, %v669_v24  ;;  %v742_v49 = vsub.f32 1.0, %v738_v58 }
 0x567   : > { %v713_v61 = vmul.f32 %v709_v42, %v684_v30  ;;  %v743_v5 = vsub.f32 1.0, %v739_v59 }
 0x568   : > { %v716_v50 = vadd.f32 0.2548296, %v712_v60  ;;  %v746_v0 = vmul.f32 %v742_v49, %v610_v8 }
 0x569   : > { %v717_v63 = vadd.f32 0.2548296, %v713_v61  ;;  %v747_v19 = vmul.f32 %v743_v5, %v611_v12 }
 0x56a   : > { %v720_v22 = vmul.f32 %v716_v50, %v669_v24  ;;  %v750_v26 = vadd.f32 1.0, %v746_v0  ;;  %v613_v24 = vsel %vm609_vm3, -1.0, %v1122_v7 }
 0x56b   : > { %v721_v9 = vmul.f32 %v717_v63, %v684_v30  ;;  %v751_v25 = vadd.f32 1.0, %v747_v19  ;;  %v600_v30 = vmul.f32 0.5, %v1280_v13 }
 0x56c   : > { %v740_v11 = vmul.f32 %v1008_v6, %v720_v22  ;;  %v754_v33 = vmul.f32 %v750_v26, %v598_v29 }
 0x56d   : > { %v741_v3 = vmul.f32 %v1010_v10, %v721_v9  ;;  %v755_v27 = vmul.f32 %v751_v25, %v599_v31 }
 0x56e   : > { %v744_v20 = vsub.f32 1.0, %v740_v11 }
 0x56f   : > { %v745_v4 = vsub.f32 1.0, %v741_v3 }
 0x570   : > { %v748_v23 = vmul.f32 %v744_v20, %v612_v21 }
 0x571   : > { %v749_v28 = vmul.f32 %v745_v4, %v613_v24 }
 0x572   : > { %v752_v15 = vadd.f32 1.0, %v748_v23 }
 0x573   : > { %v753_v32 = vadd.f32 1.0, %v749_v28 }
 0x574   : > { %v756_v34 = vmul.f32 %v752_v15, %v600_v30 }
 0x575   : > { %v757_v35 = vmul.f32 %v753_v32, %v601_v16 }
 0x576   : > { %v758_v36 = vpack.c.bf16 %v756_v34, %v754_v33 }
 0x577   : > { %v759_v37 = vpack.c.bf16 %v757_v35, %v755_v27 }
 0x578   : > { %774 = vmatpush.bf16.msra.mxu2 %v758_v36 }
 0x579   : > { %787 = vmatpush.bf16.msra.mxu3 %v759_v37 }
 0x57b   : > { %909 = vmatmul.msk.bf16.vlgmr.msra.gmra.mxu2 %vm408_vm6, %v535_v1 }
 0x57c   : > { %910 = vmatmul.msk.bf16.vlgmr.msra.gmra.mxu3 %vm408_vm6, %v535_v1 }
 0x5ae   : > { %v795_v38 = vpop.permute.xlu2 %794 }
 0x5ba   : > { %v762_v2 = vpop.permute.xlu1 %761 }
 0x5fe   : > { %v776_v13 = vpop.f32.mrf.mxu2 }
 0x5ff   : > { %v789_v14 = vpop.f32.mrf.mxu3  ;;  %v777_v39 = vadd.f32 %v776_v13, %v762_v2 }
 0x600   : > { %v790_v40 = vadd.f32 %v789_v14, %v762_v2 }
 0x601   : > { %v797_v43 = vmul.f32 %v795_v38, %v777_v39 }
 0x602   : > { %v798_v41 = vmul.f32 %v795_v38, %v790_v40 }
 0x604   : > { %v801_v44 = vrot.slane %v798_v41, 4 }
 0x606   : > { %v802_v45 = vsel %vm278_vm0, %v797_v43, %v801_v44  ;;  %v778_v17 = vpop.f32.mrf.mxu2 }
 0x607   : > { %v804_v46 = vadd.f32 %v802_v45, %v1244_v62  ;;  %v791_v47 = vpop.f32.mrf.mxu3 }
 0x609   : > { %805 = vst [vmem:[%s259_s9] sm:$0xff] %v804_v46 }
 0x60a   : > { %1068 = shalt.err (!%p1065_p8)
}
 0x60b   : > { %923 = dma.vmem_to_hbm [thread:$0]  (%p1196_p5), %s821_s10, 128, %s823_s11, %s807_s25  }
 0x60c PF: > { %p935_p9 = scmp.ge.s32.totalorder %s1107_s24, 2  ;;  %s834_s18 = sand.u32 1, %s1095_s21  }
 0x60d   : > { %s835_s20 = scalar_lea.sflag [#allocation5], %s834_s18 }
 0x60e   : > { %p930_p10 = pnand %p935_p9, %p1200_p6 }
 0x610   : > { %p931_p11 = pneg %p930_p10 }
 0x612   : > { %1090 = dma.done.wait (%p931_p11), %s835_s20, 128  }
 0x613   : > { %1092 = vsyncadd (%p931_p11), %s835_s20, 4294967168  ;;  %p17_p12 = scmp.ge.s32.totalorder %s1183_s27, 4   ;;  %s1388_s21 = smov %s1099_s22 }
 0x614   : > { %s1389_s22 = smov %s1103_s23  ;;  %s1390_s23 = smov %s1194_s30 }
 0x615   : > { %s1391_s24 = smov %s1183_s27  ;;  %19 = sbr.rel (!%p17_p12) target bundleno = 4 (0x4), region = 84 }
 0x61a   :  { %841 = vsyncpa [#allocation4], 1 }
 0x61b   :  { %843 = vsyncpa [#allocation4 + $0x1], 1 }
 0x61c   :  { %844 = vsyncpa [#allocation5], 1 }
 0x61d   :  { %846 = vsyncpa [#allocation5 + $0x1], 1 }

</bundles_post_ra>
